<compile_context>
chip_gen: v7x
topology: tpu7x:2x2x1
jax: 0.10.0
libtpu: 0.0.40
codegen_flags: <defaults>
</compile_context>

<pallas_src>
import functools

import jax
import jax.numpy as jnp
from jax.experimental import pallas as pl
from jax.experimental.pallas import tpu as pltpu


# ----------------------------------------------------------------------------
# Kernel
# ----------------------------------------------------------------------------
def _encoder_kernel(x_ref, w1_ref, b1_ref, w2_ref, b2_ref, w3_ref, b3_ref,
                    w4_ref, b4_ref, o_ref, *, nb, cin, length, act_dtype):
    """One block of `nb` batch elements per grid step.

    x_ref : (nb*cin, L)   bf16  -- NCL flattened on the sublane axis
    wK_ref: (3*Cin_k, Cout_k) bf16 -- tap-fused conv weights [W_t0; W_t1; W_t2]
    bK_ref: (1, Cout_k)   f32
    w4_ref: (64, 4) bf16, b4_ref: (1, 4) f32   (1x1 conv == plain matmul)
    o_ref : (nb*4, L//4)  f32  -- NCL flattened on the sublane axis
    """
    rows = nb * length
    l4 = length // 4

    # ---- NCL -> (nb*L, cin): ONE batched relayout (rides the paid DMA).
    x_flat = x_ref[...].astype(act_dtype)                       # (nb*cin, L)
    x = x_flat.reshape(nb, cin, length).transpose(0, 2, 1).reshape(rows, cin)

    # ---- boundary masks, hoisted: conv1/conv2 share period=L, conv3 uses L/2.
    def boundary_masks(period, nrows):
        idx = jax.lax.broadcasted_iota(jnp.int32, (nrows, 1), 0)
        if (period & (period - 1)) == 0:          # power of two -> bitwise AND
            local = jnp.bitwise_and(idx, period - 1)
        else:
            local = idx % period
        return local == 0, local == (period - 1)

    if nb > 1:
        m_first_a, m_last_a = boundary_masks(length, rows)
        m_first_b, m_last_b = boundary_masks(length // 2, rows // 2)
    else:  # single batch element: zero-padded ends already give 'same' padding
        m_first_a = m_last_a = m_first_b = m_last_b = None

    def conv3_relu(h, w_ref, b_ref, m_first, m_last):
        # 'same' k=3 conv as ONE tap-fused matmul:
        #   xc = [shift(+1) | h | shift(-1)]  (lane concat, (rows, 3C))
        #   W  = [W_tap0; W_tap1; W_tap2]     ((3C, Cout), built in wrapper)
        r, c = h.shape
        zrow = jnp.zeros((1, c), h.dtype)
        padded = jnp.concatenate([zrow, h, zrow], axis=0)        # (r+2, c)
        h_prev = padded[:r, :]                                   # h[i-1], 0 at row 0
        h_next = padded[2:, :]                                   # h[i+1], 0 at last row
        if m_first is not None:                                  # internal batch edges
            zero = jnp.zeros_like(h)
            h_prev = jnp.where(m_first, zero, h_prev)
            h_next = jnp.where(m_last, zero, h_next)
        xc = jnp.concatenate([h_prev, h, h_next], axis=1).astype(jnp.bfloat16)
        y = jnp.dot(xc, w_ref[...],
                    preferred_element_type=jnp.float32) + b_ref[...]
        return jnp.maximum(y, 0.0).astype(act_dtype)

    def maxpool2(h):
        r, c = h.shape
        return jnp.max(h.reshape(r // 2, 2, c), axis=1)

    h = conv3_relu(x, w1_ref, b1_ref, m_first_a, m_last_a)   # (nb*L,   64)
    h = conv3_relu(h, w2_ref, b2_ref, m_first_a, m_last_a)   # (nb*L,   64)
    h = maxpool2(h)                                           # (nb*L/2, 64)
    h = conv3_relu(h, w3_ref, b3_ref, m_first_b, m_last_b)   # (nb*L/2, 64)
    h = maxpool2(h)                                           # (nb*L/4, 64)

    out = jnp.dot(h.astype(jnp.bfloat16), w4_ref[...],
                  preferred_element_type=jnp.float32) + b4_ref[...]  # (nb*l4, 4)

    # ---- ONE batched relayout + ONE lane-dense store (no per-batch loop).
    o_ref[...] = (out.reshape(nb, l4, 4)
                     .transpose(0, 2, 1)
                     .reshape(nb * 4, l4)
                     .astype(o_ref.dtype))


# ----------------------------------------------------------------------------
# Helpers
# ----------------------------------------------------------------------------
def _bf16_activations_ok():
    """bf16 VPU exists on v6e/v7x; keep f32 elementwise path elsewhere."""
    try:
        kind = jax.devices()[0].device_kind.lower()
    except Exception:
        return False
    return ("v6" in kind) or ("v7" in kind)


def _pick_batch_block(n, cin, length, max_rows=4096):
    """Batch elements folded per grid step.

    Constraints:
      * NB divides N.
      * the flattened blocks (NB*cin, L) and (NB*4, L//4) keep their sublane
        dim a multiple of 8 unless the block covers the whole array.
      * prefer >=2 grid steps when possible (v7x has 2 TensorCores).
      * NB*L <= max_rows to amortize ~0.35us/step overhead and bound VMEM.
    """
    def aligned(nb):
        return (nb * cin) % 8 == 0 and (nb * 4) % 8 == 0

    aligned_nbs = [nb for nb in range(1, n + 1) if n % nb == 0 and aligned(nb)]
    cands = [nb for nb in aligned_nbs if nb * length <= max_rows and n // nb >= 2]
    if cands:
        return max(cands)
    if aligned_nbs:
        return min(aligned_nbs)
    return n                      # full-array block, always legal


def _vmem_bytes_estimate(nb, cin, length, act_bytes):
    """Rough live-intermediate budget (conservative)."""
    rows = nb * length
    l4 = length // 4
    io = 2 * (nb * cin * length * 2) + 2 * (nb * 4 * l4 * 4)         # dbl-buffered I/O
    w = 2 * ((3 * cin * 64 + 2 * 3 * 64 * 64 + 64 * 4) * 2 + (3 * 64 + 4) * 4)
    act = rows * (3 * 64 * act_bytes    # xc
                  + 3 * 64 * act_bytes  # h / h_prev / h_next
                  + 64 * 4)             # f32 matmul output
    return io + w + act


# ----------------------------------------------------------------------------
# Wrapper
# ----------------------------------------------------------------------------
@jax.jit
def encoder_forward(x_ncl, params):
    """x_ncl: (N, C, L) float32  ->  (N, 4, L//4) float32 (PyTorch semantics)."""
    N, Cin, L = x_ncl.shape
    assert L % 4 == 0, "length must be divisible by 4 (two k=2 maxpools)"
    L4 = L // 4

    use_bf16_act = _bf16_activations_ok()
    act_dtype = jnp.bfloat16 if use_bf16_act else jnp.float32

    NB = _pick_batch_block(N, Cin, L)
    assert N % NB == 0

    est = _vmem_bytes_estimate(NB, Cin, L, 2 if use_bf16_act else 4)
    assert est <= 44 * 1024 * 1024, (
        f"estimated VMEM {est/2**20:.1f} MiB exceeds budget; reduce max_rows "
        f"or add L-tiling with conv halos (v7x has 64 MiB VMEM)")
    vmem_limit = int(min(64 * 1024 * 1024, max(32 * 1024 * 1024, 2 * est)))

    # PyTorch conv weight (out, in, 3) -> tap-fused (3*in, out), bf16 for MXU.
    def cat_taps(w):
        k_in_out = jnp.transpose(w, (2, 1, 0))                 # (3, in, out)
        return k_in_out.reshape(3 * w.shape[1], w.shape[0]).astype(jnp.bfloat16)

    w1 = cat_taps(params["w1"]); b1 = params["b1"][None, :].astype(jnp.float32)
    w2 = cat_taps(params["w2"]); b2 = params["b2"][None, :].astype(jnp.float32)
    w3 = cat_taps(params["w3"]); b3 = params["b3"][None, :].astype(jnp.float32)
    w4 = jnp.transpose(params["w4"][:, :, 0], (1, 0)).astype(jnp.bfloat16)  # (64, 4)
    b4 = params["b4"][None, :].astype(jnp.float32)

    # Flatten batch into the sublane axis (free reshape of contiguous NCL);
    # bf16 input halves DMA bytes, accumulation stays f32 in-kernel.
    x_flat = x_ncl.reshape(N * Cin, L).astype(jnp.bfloat16)

    full2d = lambda a: pl.BlockSpec(a.shape, lambda i: (0, 0))

    kernel = functools.partial(_encoder_kernel, nb=NB, cin=Cin, length=L,
                               act_dtype=act_dtype)

    out_flat = pl.pallas_call(
        kernel,
        out_shape=jax.ShapeDtypeStruct((N * 4, L4), jnp.float32),
        grid=(N // NB,),
        in_specs=[
            pl.BlockSpec((NB * Cin, L), lambda i: (i, 0)),
            full2d(w1), full2d(b1),
            full2d(w2), full2d(b2),
            full2d(w3), full2d(b3),
            full2d(w4), full2d(b4),
        ],
        out_specs=pl.BlockSpec((NB * 4, L4), lambda i: (i, 0)),
        compiler_params=pltpu.CompilerParams(
            dimension_semantics=("parallel",),
            vmem_limit_bytes=vmem_limit),
    )(x_flat, w1, b1, w2, b2, w3, b3, w4, b4)

    return out_flat.reshape(N, 4, L4)          # native NCL


# ----------------------------------------------------------------------------
# Pure-JAX reference (mirrors the kernel's bf16 MXU-operand quantization so the
# comparison stays tight; math/accumulation in f32 like the kernel).
# ----------------------------------------------------------------------------
def encoder_reference(x, p):
    q = lambda a: a.astype(jnp.bfloat16).astype(jnp.float32)

    def conv(h, w, b, pad):
        y = jax.lax.conv_general_dilated(
            q(h), q(w), window_strides=(1,), padding=pad,
            dimension_numbers=("NCH", "OIH", "NCH"),
            precision=jax.lax.Precision.HIGHEST)
        return y + b[None, :, None]

    h = jax.nn.relu(conv(x, p["w1"], p["b1"], "SAME"))
    h = jax.nn.relu(conv(h, p["w2"], p["b2"], "SAME"))
    h = h.reshape(h.shape[0], h.shape[1], h.shape[2] // 2, 2).max(-1)
    h = jax.nn.relu(conv(h, p["w3"], p["b3"], "SAME"))
    h = h.reshape(h.shape[0], h.shape[1], h.shape[2] // 2, 2).max(-1)
    return conv(h, p["w4"], p["b4"], "VALID")


# ----------------------------------------------------------------------------
# Deterministic parameter init (PyTorch-shaped: (out, in, k) and (out,))
# ----------------------------------------------------------------------------
def init_params(key, channels):
    keys = jax.random.split(key, 8)
    def w(k, shape, fan_in):
        bound = 1.0 / jnp.sqrt(fan_in)
        return jax.random.uniform(k, shape, jnp.float32, -bound, bound)
    return {
        "w1": w(keys[0], (64, channels, 3), channels * 3),
        "b1": w(keys[1], (64,), channels * 3),
        "w2": w(keys[2], (64, 64, 3), 64 * 3),
        "b2": w(keys[3], (64,), 64 * 3),
        "w3": w(keys[4], (64, 64, 3), 64 * 3),
        "b3": w(keys[5], (64,), 64 * 3),
        "w4": w(keys[6], (4, 64, 1), 64),
        "b4": w(keys[7], (4,), 64),
    }


if __name__ == "__main__":
    key = jax.random.PRNGKey(0)
    k_x, k_p = jax.random.split(key)

    N, C, L = 2, 4, 16                      # small shapes: batch=2, ch=4, len=16
    x = jax.random.normal(k_x, (N, C, L), dtype=jnp.float32)
    params = init_params(k_p, C)

    out = jax.block_until_ready(encoder_forward(x, params))
    ref = encoder_reference(x, params)

    assert out.shape == (N, 4, L // 4), out.shape
    max_err = float(jnp.max(jnp.abs(out - ref)))
    assert jnp.allclose(out, ref, atol=2e-2, rtol=2e-2), max_err

    print("KERNEL_OK")
</pallas_src>

<mosaic_0001>
module attributes {stable_mosaic.version = 11 : i64} {
  func.func @_encoder_kernel(%arg0: i32, %arg1: memref<8x16xbf16, #tpu.memory_space<vmem>>, %arg2: memref<12x64xbf16, #tpu.memory_space<vmem>>, %arg3: memref<1x64xf32, #tpu.memory_space<vmem>>, %arg4: memref<192x64xbf16, #tpu.memory_space<vmem>>, %arg5: memref<1x64xf32, #tpu.memory_space<vmem>>, %arg6: memref<192x64xbf16, #tpu.memory_space<vmem>>, %arg7: memref<1x64xf32, #tpu.memory_space<vmem>>, %arg8: memref<64x4xbf16, #tpu.memory_space<vmem>>, %arg9: memref<1x4xf32, #tpu.memory_space<vmem>>, %arg10: memref<8x4xf32, #tpu.memory_space<vmem>>) attributes {dimension_semantics = [#tpu.dimension_semantics<parallel>], iteration_bounds = array<i64: 1>, scalar_prefetch = 0 : i64, scratch_operands = 0 : i64, tpu.core_type = #tpu.core_type<tc>, window_params = [{transform_indices = @transform_0, window_bounds = array<i64: 8, 16>}, {pipeline_mode = #tpu.pipeline_mode<synchronous>, transform_indices = @transform_1, window_bounds = array<i64: 12, 64>}, {pipeline_mode = #tpu.pipeline_mode<synchronous>, transform_indices = @transform_2, window_bounds = array<i64: 1, 64>}, {pipeline_mode = #tpu.pipeline_mode<synchronous>, transform_indices = @transform_3, window_bounds = array<i64: 192, 64>}, {pipeline_mode = #tpu.pipeline_mode<synchronous>, transform_indices = @transform_4, window_bounds = array<i64: 1, 64>}, {pipeline_mode = #tpu.pipeline_mode<synchronous>, transform_indices = @transform_5, window_bounds = array<i64: 192, 64>}, {pipeline_mode = #tpu.pipeline_mode<synchronous>, transform_indices = @transform_6, window_bounds = array<i64: 1, 64>}, {pipeline_mode = #tpu.pipeline_mode<synchronous>, transform_indices = @transform_7, window_bounds = array<i64: 64, 4>}, {pipeline_mode = #tpu.pipeline_mode<synchronous>, transform_indices = @transform_8, window_bounds = array<i64: 1, 4>}, {transform_indices = @transform_9, window_bounds = array<i64: 8, 4>}]} {
    %c0 = arith.constant 0 : index
    %c0_0 = arith.constant 0 : index
    %0 = vector.load %arg1[%c0, %c0_0] : memref<8x16xbf16, #tpu.memory_space<vmem>>, vector<8x16xbf16>
    %1 = arith.extf %0 : vector<8x16xbf16> to vector<8x16xf32>
    %2 = vector.shape_cast %1 : vector<8x16xf32> to vector<2x4x16xf32>
    %3 = tpu.transpose %2, [0, 2, 1] : vector<2x4x16xf32> -> vector<2x16x4xf32>
    %4 = vector.shape_cast %3 : vector<2x16x4xf32> to vector<32x4xf32>
    %5 = tpu.iota {dimensions = array<i32: 0>} : vector<32x1xi32>
    %c15_i32 = arith.constant 15 : i32
    %6 = vector.broadcast %c15_i32 : i32 to vector<32x1xi32>
    %7 = arith.andi %5, %6 : vector<32x1xi32>
    %c0_i32 = arith.constant 0 : i32
    %8 = vector.broadcast %c0_i32 : i32 to vector<32x1xi32>
    %9 = arith.cmpi eq, %7, %8 : vector<32x1xi32>
    %c15_i32_1 = arith.constant 15 : i32
    %10 = vector.broadcast %c15_i32_1 : i32 to vector<32x1xi32>
    %11 = arith.cmpi eq, %7, %10 : vector<32x1xi32>
    %12 = tpu.iota {dimensions = array<i32: 0>} : vector<16x1xi32>
    %c7_i32 = arith.constant 7 : i32
    %13 = vector.broadcast %c7_i32 : i32 to vector<16x1xi32>
    %14 = arith.andi %12, %13 : vector<16x1xi32>
    %c0_i32_2 = arith.constant 0 : i32
    %15 = vector.broadcast %c0_i32_2 : i32 to vector<16x1xi32>
    %16 = arith.cmpi eq, %14, %15 : vector<16x1xi32>
    %c7_i32_3 = arith.constant 7 : i32
    %17 = vector.broadcast %c7_i32_3 : i32 to vector<16x1xi32>
    %18 = arith.cmpi eq, %14, %17 : vector<16x1xi32>
    %cst = arith.constant 0.000000e+00 : f32
    %19 = vector.broadcast %cst : f32 to vector<1x4xf32>
    %20 = tpu.concatenate %19, %4, %19 in 0 : vector<1x4xf32>, vector<32x4xf32>, vector<1x4xf32> -> vector<34x4xf32>
    %21 = vector.extract_strided_slice %20 {offsets = [0, 0], sizes = [32, 4], strides = [1, 1]} : vector<34x4xf32> to vector<32x4xf32>
    %22 = vector.extract_strided_slice %20 {offsets = [2, 0], sizes = [32, 4], strides = [1, 1]} : vector<34x4xf32> to vector<32x4xf32>
    %cst_4 = arith.constant 0.000000e+00 : f32
    %23 = vector.broadcast %cst_4 : f32 to vector<32x4xf32>
    %24 = vector.shape_cast %9 : vector<32x1xi1> to vector<32x1xi1>
    %25 = vector.broadcast %24 : vector<32x1xi1> to vector<32x4xi1>
    %26 = arith.select %25, %23, %21 : vector<32x4xi1>, vector<32x4xf32>
    %27 = vector.shape_cast %11 : vector<32x1xi1> to vector<32x1xi1>
    %28 = vector.broadcast %27 : vector<32x1xi1> to vector<32x4xi1>
    %29 = arith.select %28, %23, %22 : vector<32x4xi1>, vector<32x4xf32>
    %30 = tpu.concatenate %26, %4, %29 in 1 : vector<32x4xf32>, vector<32x4xf32>, vector<32x4xf32> -> vector<32x12xf32>
    %31 = arith.truncf %30 : vector<32x12xf32> to vector<32x12xbf16>
    %c0_5 = arith.constant 0 : index
    %c0_6 = arith.constant 0 : index
    %32 = vector.load %arg2[%c0_5, %c0_6] : memref<12x64xbf16, #tpu.memory_space<vmem>>, vector<12x64xbf16>
    %cst_7 = arith.constant dense<0.000000e+00> : vector<32x64xf32>
    %33 = tpu.matmul %31, %32, %cst_7 {dimension_numbers = #tpu.dot_dimension_numbers<[1], [0], [0], [1], [0, 0, 1, 1], [], []>} : vector<32x12xbf16>, vector<12x64xbf16>, vector<32x64xf32> -> vector<32x64xf32>
    %c0_8 = arith.constant 0 : index
    %c0_9 = arith.constant 0 : index
    %34 = vector.load %arg3[%c0_8, %c0_9] : memref<1x64xf32, #tpu.memory_space<vmem>>, vector<1x64xf32>
    %35 = vector.broadcast %34 : vector<1x64xf32> to vector<32x64xf32>
    %36 = arith.addf %33, %35 : vector<32x64xf32>
    %cst_10 = arith.constant 0.000000e+00 : f32
    %37 = vector.broadcast %cst_10 : f32 to vector<32x64xf32>
    %38 = arith.maximumf %36, %37 : vector<32x64xf32>
    %cst_11 = arith.constant 0.000000e+00 : f32
    %39 = vector.broadcast %cst_11 : f32 to vector<1x64xf32>
    %40 = tpu.concatenate %39, %38, %39 in 0 : vector<1x64xf32>, vector<32x64xf32>, vector<1x64xf32> -> vector<34x64xf32>
    %41 = vector.extract_strided_slice %40 {offsets = [0, 0], sizes = [32, 64], strides = [1, 1]} : vector<34x64xf32> to vector<32x64xf32>
    %42 = vector.extract_strided_slice %40 {offsets = [2, 0], sizes = [32, 64], strides = [1, 1]} : vector<34x64xf32> to vector<32x64xf32>
    %cst_12 = arith.constant 0.000000e+00 : f32
    %43 = vector.broadcast %cst_12 : f32 to vector<32x64xf32>
    %44 = vector.shape_cast %9 : vector<32x1xi1> to vector<32x1xi1>
    %45 = vector.broadcast %44 : vector<32x1xi1> to vector<32x64xi1>
    %46 = arith.select %45, %43, %41 : vector<32x64xi1>, vector<32x64xf32>
    %47 = vector.shape_cast %11 : vector<32x1xi1> to vector<32x1xi1>
    %48 = vector.broadcast %47 : vector<32x1xi1> to vector<32x64xi1>
    %49 = arith.select %48, %43, %42 : vector<32x64xi1>, vector<32x64xf32>
    %50 = tpu.concatenate %46, %38, %49 in 1 : vector<32x64xf32>, vector<32x64xf32>, vector<32x64xf32> -> vector<32x192xf32>
    %51 = arith.truncf %50 : vector<32x192xf32> to vector<32x192xbf16>
    %c0_13 = arith.constant 0 : index
    %c0_14 = arith.constant 0 : index
    %52 = vector.load %arg4[%c0_13, %c0_14] : memref<192x64xbf16, #tpu.memory_space<vmem>>, vector<192x64xbf16>
    %cst_15 = arith.constant dense<0.000000e+00> : vector<32x64xf32>
    %53 = tpu.matmul %51, %52, %cst_15 {dimension_numbers = #tpu.dot_dimension_numbers<[1], [0], [0], [1], [0, 0, 1, 1], [], []>} : vector<32x192xbf16>, vector<192x64xbf16>, vector<32x64xf32> -> vector<32x64xf32>
    %c0_16 = arith.constant 0 : index
    %c0_17 = arith.constant 0 : index
    %54 = vector.load %arg5[%c0_16, %c0_17] : memref<1x64xf32, #tpu.memory_space<vmem>>, vector<1x64xf32>
    %55 = vector.broadcast %54 : vector<1x64xf32> to vector<32x64xf32>
    %56 = arith.addf %53, %55 : vector<32x64xf32>
    %cst_18 = arith.constant 0.000000e+00 : f32
    %57 = vector.broadcast %cst_18 : f32 to vector<32x64xf32>
    %58 = arith.maximumf %56, %57 : vector<32x64xf32>
    %59 = vector.shape_cast %58 : vector<32x64xf32> to vector<16x2x64xf32>
    %cst_19 = arith.constant dense<0xFF800000> : vector<16x64xf32>
    %60 = vector.multi_reduction <maximumf>, %59, %cst_19 [1] : vector<16x2x64xf32> to vector<16x64xf32>
    %cst_20 = arith.constant 0.000000e+00 : f32
    %61 = vector.broadcast %cst_20 : f32 to vector<1x64xf32>
    %62 = tpu.concatenate %61, %60, %61 in 0 : vector<1x64xf32>, vector<16x64xf32>, vector<1x64xf32> -> vector<18x64xf32>
    %63 = vector.extract_strided_slice %62 {offsets = [0, 0], sizes = [16, 64], strides = [1, 1]} : vector<18x64xf32> to vector<16x64xf32>
    %64 = vector.extract_strided_slice %62 {offsets = [2, 0], sizes = [16, 64], strides = [1, 1]} : vector<18x64xf32> to vector<16x64xf32>
    %cst_21 = arith.constant 0.000000e+00 : f32
    %65 = vector.broadcast %cst_21 : f32 to vector<16x64xf32>
    %66 = vector.shape_cast %16 : vector<16x1xi1> to vector<16x1xi1>
    %67 = vector.broadcast %66 : vector<16x1xi1> to vector<16x64xi1>
    %68 = arith.select %67, %65, %63 : vector<16x64xi1>, vector<16x64xf32>
    %69 = vector.shape_cast %18 : vector<16x1xi1> to vector<16x1xi1>
    %70 = vector.broadcast %69 : vector<16x1xi1> to vector<16x64xi1>
    %71 = arith.select %70, %65, %64 : vector<16x64xi1>, vector<16x64xf32>
    %72 = tpu.concatenate %68, %60, %71 in 1 : vector<16x64xf32>, vector<16x64xf32>, vector<16x64xf32> -> vector<16x192xf32>
    %73 = arith.truncf %72 : vector<16x192xf32> to vector<16x192xbf16>
    %c0_22 = arith.constant 0 : index
    %c0_23 = arith.constant 0 : index
    %74 = vector.load %arg6[%c0_22, %c0_23] : memref<192x64xbf16, #tpu.memory_space<vmem>>, vector<192x64xbf16>
    %cst_24 = arith.constant dense<0.000000e+00> : vector<16x64xf32>
    %75 = tpu.matmul %73, %74, %cst_24 {dimension_numbers = #tpu.dot_dimension_numbers<[1], [0], [0], [1], [0, 0, 1, 1], [], []>} : vector<16x192xbf16>, vector<192x64xbf16>, vector<16x64xf32> -> vector<16x64xf32>
    %c0_25 = arith.constant 0 : index
    %c0_26 = arith.constant 0 : index
    %76 = vector.load %arg7[%c0_25, %c0_26] : memref<1x64xf32, #tpu.memory_space<vmem>>, vector<1x64xf32>
    %77 = vector.broadcast %76 : vector<1x64xf32> to vector<16x64xf32>
    %78 = arith.addf %75, %77 : vector<16x64xf32>
    %cst_27 = arith.constant 0.000000e+00 : f32
    %79 = vector.broadcast %cst_27 : f32 to vector<16x64xf32>
    %80 = arith.maximumf %78, %79 : vector<16x64xf32>
    %81 = vector.shape_cast %80 : vector<16x64xf32> to vector<8x2x64xf32>
    %cst_28 = arith.constant dense<0xFF800000> : vector<8x64xf32>
    %82 = vector.multi_reduction <maximumf>, %81, %cst_28 [1] : vector<8x2x64xf32> to vector<8x64xf32>
    %83 = arith.truncf %82 : vector<8x64xf32> to vector<8x64xbf16>
    %c0_29 = arith.constant 0 : index
    %c0_30 = arith.constant 0 : index
    %84 = vector.load %arg8[%c0_29, %c0_30] : memref<64x4xbf16, #tpu.memory_space<vmem>>, vector<64x4xbf16>
    %cst_31 = arith.constant dense<0.000000e+00> : vector<8x4xf32>
    %85 = tpu.matmul %83, %84, %cst_31 {dimension_numbers = #tpu.dot_dimension_numbers<[1], [0], [0], [1], [0, 0, 1, 1], [], []>} : vector<8x64xbf16>, vector<64x4xbf16>, vector<8x4xf32> -> vector<8x4xf32>
    %c0_32 = arith.constant 0 : index
    %c0_33 = arith.constant 0 : index
    %86 = vector.load %arg9[%c0_32, %c0_33] : memref<1x4xf32, #tpu.memory_space<vmem>>, vector<1x4xf32>
    %87 = vector.broadcast %86 : vector<1x4xf32> to vector<8x4xf32>
    %88 = arith.addf %85, %87 : vector<8x4xf32>
    %89 = vector.shape_cast %88 : vector<8x4xf32> to vector<2x4x4xf32>
    %90 = tpu.transpose %89, [0, 2, 1] : vector<2x4x4xf32> -> vector<2x4x4xf32>
    %91 = vector.shape_cast %90 : vector<2x4x4xf32> to vector<8x4xf32>
    %c0_34 = arith.constant 0 : index
    %c0_35 = arith.constant 0 : index
    %92 = vector.load %arg10[%c0_34, %c0_35] : memref<8x4xf32, #tpu.memory_space<vmem>>, vector<8x4xf32>
    tpu.vector_store %arg10[%c0_34, %c0_35], %91 {strides = array<i32>} : memref<8x4xf32, #tpu.memory_space<vmem>>, vector<8x4xf32>,
    return
  }
  func.func @transform_0(%arg0: i32) -> (i32, i32) {
    %c0_i32 = arith.constant 0 : i32
    %c0_i32_0 = arith.constant 0 : i32
    return %arg0, %c0_i32 : i32, i32
  }
  func.func @transform_1(%arg0: i32) -> (i32, i32) {
    %c0_i32 = arith.constant 0 : i32
    %c0_i32_0 = arith.constant 0 : i32
    %c0_i32_1 = arith.constant 0 : i32
    return %c0_i32, %c0_i32_0 : i32, i32
  }
  func.func @transform_2(%arg0: i32) -> (i32, i32) {
    %c0_i32 = arith.constant 0 : i32
    %c0_i32_0 = arith.constant 0 : i32
    %c0_i32_1 = arith.constant 0 : i32
    return %c0_i32, %c0_i32_0 : i32, i32
  }
  func.func @transform_3(%arg0: i32) -> (i32, i32) {
    %c0_i32 = arith.constant 0 : i32
    %c0_i32_0 = arith.constant 0 : i32
    %c0_i32_1 = arith.constant 0 : i32
    return %c0_i32, %c0_i32_0 : i32, i32
  }
  func.func @transform_4(%arg0: i32) -> (i32, i32) {
    %c0_i32 = arith.constant 0 : i32
    %c0_i32_0 = arith.constant 0 : i32
    %c0_i32_1 = arith.constant 0 : i32
    return %c0_i32, %c0_i32_0 : i32, i32
  }
  func.func @transform_5(%arg0: i32) -> (i32, i32) {
    %c0_i32 = arith.constant 0 : i32
    %c0_i32_0 = arith.constant 0 : i32
    %c0_i32_1 = arith.constant 0 : i32
    return %c0_i32, %c0_i32_0 : i32, i32
  }
  func.func @transform_6(%arg0: i32) -> (i32, i32) {
    %c0_i32 = arith.constant 0 : i32
    %c0_i32_0 = arith.constant 0 : i32
    %c0_i32_1 = arith.constant 0 : i32
    return %c0_i32, %c0_i32_0 : i32, i32
  }
  func.func @transform_7(%arg0: i32) -> (i32, i32) {
    %c0_i32 = arith.constant 0 : i32
    %c0_i32_0 = arith.constant 0 : i32
    %c0_i32_1 = arith.constant 0 : i32
    return %c0_i32, %c0_i32_0 : i32, i32
  }
  func.func @transform_8(%arg0: i32) -> (i32, i32) {
    %c0_i32 = arith.constant 0 : i32
    %c0_i32_0 = arith.constant 0 : i32
    %c0_i32_1 = arith.constant 0 : i32
    return %c0_i32, %c0_i32_0 : i32, i32
  }
  func.func @transform_9(%arg0: i32) -> (i32, i32) {
    %c0_i32 = arith.constant 0 : i32
    %c0_i32_0 = arith.constant 0 : i32
    return %arg0, %c0_i32 : i32, i32
  }
}

</mosaic_0001>

<bundles_post_ra>
// kernel: encoder_forward.1
= control target key start
LH: loop header
LB: loop body
LE: loop exit
PB: predicated region body
PF: predicated region fallthrough
CT: control target
= control target key end

     0   :  { %s1850_s0 = inlined_call_operand.vmem [shape: bf16[8,16], index: 0, kind: input, shape index: {}]   ;;  %s1851_s1 = inlined_call_operand.vmem [shape: bf16[12,64], index: 1, kind: input, shape index: {}]   ;;  %s1852_s2 = inlined_call_operand.vmem [shape: f32[1,64], index: 2, kind: input, shape index: {}]   ;;  %s1853_s3 = inlined_call_operand.vmem [shape: bf16[192,64], index: 3, kind: input, shape index: {}]   ;;  %s1854_s4 = inlined_call_operand.vmem [shape: f32[1,64], index: 4, kind: input, shape index: {}]   ;;  %s1855_s5 = inlined_call_operand.vmem [shape: bf16[192,64], index: 5, kind: input, shape index: {}]   ;;  %s1856_s6 = inlined_call_operand.vmem [shape: f32[1,64], index: 6, kind: input, shape index: {}]   ;;  %s1857_s7 = inlined_call_operand.vmem [shape: bf16[64,4], index: 7, kind: input, shape index: {}]   ;;  %s1858_s8 = inlined_call_operand.vmem [shape: f32[1,4], index: 8, kind: input, shape index: {}]   ;;  %s1859_s9 = inlined_call_operand.hbm [shape: f32[8,4], index: 9, kind: output, shape index: {}]  }
   0x1   :  { %v34_v0 = vld [vmem:[%s1850_s0] sm:$0xf] }
   0x2   :  { %v35_v1 = vunpack.c.l.bf16 %v34_v0 }
   0x4   :  { %v37_v2 = vcombine.high %v35_v1, %v35_v1 }
   0x6   :  { %v1336_v3 = vpack.i.bf16 %v37_v2, %v35_v1 }
   0x8   :  { %1337 = vxpose.xlu0.b32.start.end [1/1] (short) (narrow) %v1336_v3, 16 }
   0x9   :  { %14 = vsyncpa [#allocation3], 0  ;;  %v103_v4 = vlaneseq  ;;  %vm130_vm0 = vcmask 1040384   ;;  %vm167_vm1 = vcmask 1045504   ;;  %v1383_v20 = vld [vmem:[%s1851_s1] sm:$0x3f]  }
   0xa   :  { %s1436_s12 = smov 4   ;;  %1327 = vmatprep.subr.msk.bf16.mxu0 %vm167_vm1, %v1383_v20  ;;  %v247_v28 = vsel %vm167_vm1, %v1383_v20, 0  ;;  %s1437_s1 = smov 8   ;;  %vm213_vm5 = vcmask 31744   ;;  %vm218_vm6 = vcmask 64512   ;;  %vm239_vm8 = vcmask 97280  }
   0xb   :  { %v1497_v5 = vshrl.u32 %v103_v4, 7  ;;  %1310 = vmatpush3.bf16.msra.mxu0 %v247_v28  ;;  %v1392_v20 = vld [vmem:[%s1853_s3 + $0x40] sm:$0xff]   ;;  %vm355_vm9 = vcmask 523264   ;;  %v1398_v53 = vld [vmem:[%s1855_s5 + $0x10] sm:$0xff]   ;;  %vm614_vm10 = vcmask 517120   ;;  %vm743_vm11 = vcmask 1042434  }
   0xc   :  { %vm755_vm12 = vcmask 1041409   ;;  %vm745_vm13 = vcmask 1043459   ;;  %vm747_vm14 = vcmask 1044484   ;;  %vm749_vm15 = vcmask 1045509   ;;  %s1443_s24 = smov [#allocation2]  }
   0xd   :  { %v1500_v7 = vadd.s32 8, %v1497_v5  ;;  %v107_v13 = vadd.s32 24, %v1497_v5  ;;  %v106_v44 = vadd.s32 16, %v1497_v5  ;;  %v108_v45 = vand.u32 15, %v1497_v5  ;;  %s1254_s25 = sshll.u32 %s1443_s24, 4  ;;  %s1255_s25 = int_to_ptr.vmem [resolvable:$true] %s1254_s25 }
   0xe   :  { %s1412_s26 = scalar_lea.vmem %s1255_s25, 128  ;;  %p1417_p1 = scmp.lt.s32.totalorder %s1255_s25, %s1255_s25 }
   0xf   :  { %v109_v12 = vand.u32 15, %v1500_v7  ;;  %v111_v24 = vand.u32 15, %v107_v13  ;;  %v110_v48 = vand.u32 15, %v106_v44  ;;  %vm1532_vm4 = vcmp.eq.s32.totalorder %v108_v45, 0  ;;  %v1385_v13 = vld [vmem:[%s1853_s3 + $0x8] sm:$0xff]   ;;  %p1413_p0 = scmp.ne.s32.totalorder %s1255_s25, %s1412_s26  ;;  %p1418_p2 = scmp.lt.s32.totalorder %s1412_s26, %s1412_s26 }
  0x11   :  { %vm1508_vm2 = vcmp.eq.s32.totalorder %v109_v12, 15  ;;  %vm1520_vm3 = vcmp.eq.s32.totalorder %v111_v24, 15  ;;  %vm1536_vm7 = vcmp.eq.s32.totalorder %v110_v48, 0  ;;  %v1438_v12 = vmov 0   ;;  %v1395_v24 = vld [vmem:[%s1853_s3 + $0x58] sm:$0xff]   ;;  %p1419_p3 = por %p1418_p2, %p1417_p1 }
  0x12   :  { %473 = vmatprep.subr.bf16.mxu1 %v1438_v12  ;;  %919 = vmatprep.subr.bf16.mxu0 %v1438_v12 }
  0x13   :  { %p1420_p4 = pnand %p1419_p3, %p1413_p0 }
  0x88   :  { %v1338_v6 = vpop.trf.xlu0 }
  0x89   :  { %v1339_v8 = vunpack.i.l.bf16 %v1338_v6  ;;  %v1342_v10 = vunpack.i.h.bf16 %v1338_v6 }
  0x8b   :  { %v131_v9 = vrot.slane %v1339_v8, 7  ;;  %v134_v18 = vrot.slane %v1342_v10, 7 }
  0x8c   :  { %v1343_v11 = vpop.trf.xlu0 }
  0x8d   :  { %v1344_v14 = vunpack.i.l.bf16 %v1343_v11  ;;  %v143_v15 = vsel %vm130_vm0, 0.0, %v131_v9  ;;  %v1347_v16 = vunpack.i.h.bf16 %v1343_v11  ;;  %v1384_v11 = vld [vmem:[%s1853_s3] sm:$0xff]  }
  0x8e   :  { %v168_v27 = vrot.slane %v143_v15, 2  ;;  %v153_v56 = vsel %vm1532_vm4, 0.0, %v143_v15  ;;  %474 = vmatpush1.bf16.msra.mxu1 %v1384_v11  ;;  %v1387_v15 = vld [vmem:[%s1853_s3 + $0x18] sm:$0xff]  }
  0x8f   :  { %v132_v17 = vrot.slane %v1344_v14, 7  ;;  %v1348_v19 = vpack.i.bf16 %v1344_v14, %v1339_v8  ;;  %v136_v21 = vrot.slane %v1347_v16, 7  ;;  %v1353_v22 = vpack.i.bf16 %v1347_v16, %v1342_v10  ;;  %475 = vmatprep.subr.bf16.mxu1 %v1438_v12  ;;  %v1386_v14 = vld [vmem:[%s1853_s3 + $0x10] sm:$0xff]   ;;  %v1388_v16 = vld [vmem:[%s1853_s3 + $0x20] sm:$0xff]  }
  0x91   :  { %v135_v25 = vsel %vm130_vm0, %v132_v17, %v134_v18  ;;  %1349 = vrot.lane.b32.xlu0 %v1348_v19, %s1436_s12  ;;  %v133_v26 = vsel %vm130_vm0, %v131_v9, %v132_v17  ;;  %v144_v29 = vsel %vm130_vm0, %v136_v21, 0.0  ;;  %v137_v30 = vsel %vm130_vm0, %v134_v18, %v136_v21  ;;  %1354 = vrot.lane.b32.xlu1 %v1353_v22, %s1436_s12  ;;  %v1389_v17 = vld [vmem:[%s1853_s3 + $0x28] sm:$0xff]   ;;  %v1390_v18 = vld [vmem:[%s1853_s3 + $0x30] sm:$0xff]  }
  0x92   :  { %v169_v31 = vrot.slane %v133_v26, 2  ;;  %v171_v32 = vrot.slane %v135_v25, 2  ;;  %v175_v33 = vrot.slane %v144_v29, 2  ;;  %v173_v34 = vrot.slane %v137_v30, 2  ;;  %476 = vmatpush1.bf16.msra.mxu1 %v1385_v13  ;;  %v1391_v19 = vld [vmem:[%s1853_s3 + $0x38] sm:$0xff]   ;;  %v1393_v21 = vld [vmem:[%s1853_s3 + $0x48] sm:$0xff]  }
  0x93   :  { %v155_v1 = vsel %vm1536_vm7, 0.0, %v135_v25  ;;  %477 = vmatprep.subr.bf16.mxu1 %v1438_v12  ;;  %v1394_v22 = vld [vmem:[%s1853_s3 + $0x50] sm:$0xff]   ;;  %v1262_v25 = vld [vmem:[%s1852_s2] ss:$0 sm:$0xff]  ;;  %s1439_s2 = smov 64  }
  0x94   :  { %v170_v35 = vsel %vm167_vm1, %v168_v27, %v169_v31  ;;  %v172_v36 = vsel %vm167_vm1, %v169_v31, %v171_v32  ;;  %v176_v39 = vsel %vm167_vm1, %v173_v34, %v175_v33  ;;  %v174_v41 = vsel %vm167_vm1, %v171_v32, %v173_v34 }
  0x95   :  { %v182_v38 = vsel %vm1508_vm2, 0.0, %v172_v36  ;;  %v184_v42 = vsel %vm1520_vm3, 0.0, %v176_v39 }
  0x96   :  { %v1358_v40 = vpack.i.bf16 %v182_v38, %v170_v35  ;;  %v1363_v43 = vpack.i.bf16 %v184_v42, %v174_v41  ;;  %478 = vmatpush1.bf16.msra.mxu1 %v1386_v14 }
  0x97   :  { %479 = vmatprep.subr.bf16.mxu1 %v1438_v12 }
  0x98   :  { %1359 = vrot.lane.b32.xlu1 %v1358_v40, %s1437_s1 }
  0x9a   :  { %480 = vmatpush1.bf16.msra.mxu1 %v1387_v15  ;;  %v1396_v15 = vld [vmem:[%s1855_s5] sm:$0xff]  }
  0x9b   :  { %481 = vmatprep.subr.bf16.mxu1 %v1438_v12 }
  0x9c   :  { %1364 = vrot.lane.b32.xlu1 %v1363_v43, %s1437_s1 }
  0x9e   :  { %482 = vmatpush1.bf16.msra.mxu1 %v1388_v16  ;;  %v1397_v16 = vld [vmem:[%s1855_s5 + $0x8] sm:$0xff]  }
  0x9f   :  { %483 = vmatprep.subr.bf16.mxu1 %v1438_v12 }
  0xa2   :  { %484 = vmatpush1.bf16.msra.mxu1 %v1389_v17  ;;  %v1399_v17 = vld [vmem:[%s1855_s5 + $0x18] sm:$0xff]  }
  0xa3   :  { %485 = vmatprep.subr.bf16.mxu1 %v1438_v12 }
  0xa6   :  { %486 = vmatpush1.bf16.msra.mxu1 %v1390_v18  ;;  %v1400_v18 = vld [vmem:[%s1855_s5 + $0x20] sm:$0xff]  }
  0xa7   :  { %487 = vmatprep.subr.bf16.mxu1 %v1438_v12 }
  0xaa   :  { %488 = vmatpush1.bf16.msra.mxu1 %v1391_v19  ;;  %v1401_v19 = vld [vmem:[%s1855_s5 + $0x28] sm:$0xff]  }
  0xab   :  { %489 = vmatprep.subr.bf16.mxu1 %v1438_v12 }
  0xae   :  { %490 = vmatpush1.bf16.msra.mxu1 %v1392_v20  ;;  %v1402_v20 = vld [vmem:[%s1855_s5 + $0x30] sm:$0xff]  }
  0xaf   :  { %491 = vmatprep.subr.bf16.mxu1 %v1438_v12 }
  0xb2   :  { %492 = vmatpush1.bf16.msra.mxu1 %v1393_v21  ;;  %v1403_v21 = vld [vmem:[%s1855_s5 + $0x38] sm:$0xff]  }
  0xb3   :  { %493 = vmatprep.subr.bf16.mxu1 %v1438_v12 }
  0xb6   :  { %494 = vmatpush1.bf16.msra.mxu1 %v1394_v22  ;;  %v1404_v22 = vld [vmem:[%s1855_s5 + $0x40] sm:$0xff]  }
  0xb7   :  { %495 = vmatprep.subr.bf16.mxu1 %v1438_v12 }
  0xba   :  { %496 = vmatpush1.bf16.msra.mxu1 %v1395_v24  ;;  %v1405_v24 = vld [vmem:[%s1855_s5 + $0x48] sm:$0xff]  }
 0x103   :  { %v1350_v46 = vpop.permute.xlu0 %1349  ;;  %v1355_v47 = vpop.permute.xlu1 %1354 }
 0x104   :  { %v1352_v49 = vunpack.i.h.bf16 %v1350_v46  ;;  %v1351_v50 = vunpack.i.l.bf16 %v1350_v46  ;;  %v1357_v57 = vunpack.i.h.bf16 %v1355_v47  ;;  %v1356_v58 = vunpack.i.l.bf16 %v1355_v47 }
 0x106   :  { %v214_v59 = vsel %vm213_vm5, %v153_v56, %v1351_v50  ;;  %v215_v60 = vsel %vm213_vm5, %v133_v26, %v1352_v49  ;;  %v217_v4 = vsel %vm213_vm5, %v137_v30, %v1357_v57  ;;  %v216_v6 = vsel %vm213_vm5, %v155_v1, %v1356_v58 }
 0x10a   :  { %v1360_v52 = vpop.permute.xlu1 %1359 }
 0x10b   :  { %v1362_v54 = vunpack.i.h.bf16 %v1360_v52  ;;  %v1361_v55 = vunpack.i.l.bf16 %v1360_v52 }
 0x10d   :  { %v219_v61 = vsel %vm218_vm6, %v214_v59, %v1361_v55  ;;  %v220_v62 = vsel %vm218_vm6, %v215_v60, %v1362_v54 }
 0x10e   :  { %v1365_v63 = vpop.permute.xlu1 %1364  ;;  %v223_v0 = vpack.c.bf16 %v220_v62, %v219_v61 }
 0x10f   :  { %v1367_v2 = vunpack.i.h.bf16 %v1365_v63  ;;  %v1366_v3 = vunpack.i.l.bf16 %v1365_v63 }
 0x110   :  { %1311 = vmatprep.mubr.msk.bf16.mxu0 %vm239_vm8, %v223_v0 }
 0x111   :  { %v222_v8 = vsel %vm218_vm6, %v217_v4, %v1367_v2  ;;  %v221_v9 = vsel %vm218_vm6, %v216_v6, %v1366_v3 }
 0x112   :  { %v224_v10 = vpack.c.bf16 %v222_v8, %v221_v9 }
 0x114   :  { %1312 = vmatmul.mubr.msk.bf16.vlgmr.msra.gmra.mrb[0].mxu0 %vm239_vm8, %v224_v10 }
 0x115   :  { %920 = vmatpush1.bf16.msra.mxu0 %v1396_v15 }
 0x116   :  { %921 = vmatprep.subr.bf16.mxu0 %v1438_v12 }
 0x119   :  { %922 = vmatpush1.bf16.msra.mxu0 %v1397_v16 }
 0x11a   :  { %923 = vmatprep.subr.bf16.mxu0 %v1438_v12 }
 0x11d   :  { %924 = vmatpush1.bf16.msra.mxu0 %v1398_v53 }
 0x11e   :  { %925 = vmatprep.subr.bf16.mxu0 %v1438_v12 }
 0x121   :  { %926 = vmatpush1.bf16.msra.mxu0 %v1399_v17 }
 0x122   :  { %927 = vmatprep.subr.bf16.mxu0 %v1438_v12 }
 0x125   :  { %928 = vmatpush1.bf16.msra.mxu0 %v1400_v18 }
 0x126   :  { %929 = vmatprep.subr.bf16.mxu0 %v1438_v12 }
 0x129   :  { %930 = vmatpush1.bf16.msra.mxu0 %v1401_v19 }
 0x12a   :  { %931 = vmatprep.subr.bf16.mxu0 %v1438_v12 }
 0x12d   :  { %932 = vmatpush1.bf16.msra.mxu0 %v1402_v20 }
 0x12e   :  { %933 = vmatprep.subr.bf16.mxu0 %v1438_v12 }
 0x131   :  { %934 = vmatpush1.bf16.msra.mxu0 %v1403_v21 }
 0x132   :  { %935 = vmatprep.subr.bf16.mxu0 %v1438_v12 }
 0x135   :  { %936 = vmatpush1.bf16.msra.mxu0 %v1404_v22 }
 0x136   :  { %937 = vmatprep.subr.bf16.mxu0 %v1438_v12 }
 0x139   :  { %938 = vmatpush1.bf16.msra.mxu0 %v1405_v24 }
 0x13a   :  { %939 = vmatprep.subr.bf16.mxu0 %v1438_v12 }
 0x1e7   :  { %v1313_v26 = vpop.f32.mrb[0].mxu0 }
 0x1e8   :  { %v292_v27 = vadd.f32 %v1313_v26, %v1262_v25  ;;  %v283_v28 = vpop.f32.mrb[1].mxu0  ;;  %v1440_v26 = vmov 1983009808  }
 0x1e9   :  { %v284_v29 = vadd.f32 %v1262_v25, %v283_v28  ;;  %v1314_v30 = vpop.f32.mrb[2].mxu0 }
 0x1ea   :  { %v300_v31 = vmax.f32 %v292_v27, 0.0  ;;  %v295_v32 = vadd.f32 %v1314_v30, %v1262_v25  ;;  %v286_v33 = vpop.f32.mrb[3].mxu0  ;;  %v532_v27 = vunpack.c.l.s4 %v1440_v26 }
 0x1eb   :  { %v298_v34 = vmax.f32 %v284_v29, 0.0  ;;  %v287_v35 = vadd.f32 %v1262_v25, %v286_v33  ;;  %v1406_v25 = vld [vmem:[%s1855_s5 + $0x50] sm:$0xff]   ;;  %v1676_v29 = vld [vmem:[%s1854_s4] ss:$0 sm:$0xff] }
 0x1ec   :  { %v301_v36 = vmax.f32 %v295_v32, 0.0  ;;  %v309_v40 = vrot.slane %v300_v31, 7  ;;  %940 = vmatpush1.bf16.msra.mxu0 %v1406_v25  ;;  %v533_v28 = vunpack.c.0.s8 %v532_v27 }
 0x1ed   :  { %v306_v38 = vrot.slane %v298_v34, 7  ;;  %v299_v39 = vmax.f32 %v287_v35, 0.0  ;;  %941 = vmatprep.subr.bf16.mxu0 %v1438_v12 }
 0x1ee   :  { %v1373_v41 = vpack.i.bf16 %v301_v36, %v300_v31  ;;  %v311_v42 = vrot.slane %v301_v36, 7  ;;  %v1679_v31 = vsub.s32 %v533_v28, %v1497_v5 }
 0x1ef   :  { %v318_v43 = vsel %vm130_vm0, 0.0, %v306_v38  ;;  %v307_v44 = vrot.slane %v299_v39, 7  ;;  %v1368_v45 = vpack.i.bf16 %v299_v39, %v298_v34 }
 0x1f0   :  { %v312_v46 = vsel %vm130_vm0, %v309_v40, %v311_v42  ;;  %v319_v47 = vsel %vm130_vm0, %v311_v42, 0.0  ;;  %v326_v54 = vrot.slane %v318_v43, 2  ;;  %v320_v4 = vsel %vm1532_vm4, 0.0, %v318_v43 }
 0x1f1   :  { %v331_v48 = vrot.slane %v312_v46, 2  ;;  %v333_v49 = vrot.slane %v319_v47, 2  ;;  %v310_v50 = vsel %vm130_vm0, %v307_v44, %v309_v40  ;;  %v308_v52 = vsel %vm130_vm0, %v306_v38, %v307_v44  ;;  %1369 = vrot.lane.b32.xlu1 %v1368_v45, %s1439_s2 }
 0x1f2   :  { %v327_v55 = vrot.slane %v308_v52, 2  ;;  %v329_v56 = vrot.slane %v310_v50, 2  ;;  %v322_v11 = vsel %vm1536_vm7, 0.0, %v310_v50  ;;  %v121_v45 = vand.u32 7, %v1500_v7 }
 0x1f3   :  { %v334_v57 = vsel %vm167_vm1, %v331_v48, %v333_v49  ;;  %v120_v49 = vand.u32 7, %v1497_v5 }
 0x1f4   :  { %v328_v58 = vsel %vm167_vm1, %v326_v54, %v327_v55  ;;  %v330_v59 = vsel %vm167_vm1, %v327_v55, %v329_v56  ;;  %v332_v60 = vsel %vm167_vm1, %v329_v56, %v331_v48  ;;  %v342_v61 = vsel %vm1520_vm3, 0.0, %v334_v57 }
 0x1f5   :  { %1374 = vrot.lane.b32.xlu1 %v1373_v41, %s1439_s2  ;;  %v340_v62 = vsel %vm1508_vm2, 0.0, %v330_v59  ;;  %v363_v63 = vpack.c.bf16 %v342_v61, %v332_v60  ;;  %vm751_vm2 = vcmask 1046534   ;;  %vm753_vm3 = vcmask 1047559  }
 0x1f6   :  { %v361_v0 = vpack.c.bf16 %v340_v62, %v328_v58  ;;  %vm1737_vm4 = vcmp.eq.s32.totalorder %v120_v49, 0  ;;  %vm1778_vm6 = vcmp.eq.s32.totalorder %v121_v45, 0  ;;  %vm125_vm7 = vcmp.eq.s32.totalorder %v121_v45, 7 }
 0x1f8   :  { %1279 = vmatprep.mubr.msk.bf16.mxu1 %vm355_vm9, %v361_v0 }
 0x263   :  { %v1370_v1 = vpop.permute.xlu1 %1369 }
 0x264   :  { %v1372_v2 = vunpack.i.h.bf16 %v1370_v1  ;;  %v1371_v3 = vunpack.i.l.bf16 %v1370_v1 }
 0x266   :  { %v356_v6 = vsel %vm355_vm9, %v320_v4, %v1371_v3  ;;  %v357_v37 = vsel %vm355_vm9, %v308_v52, %v1372_v2 }
 0x267   :  { %v1375_v8 = vpop.permute.xlu1 %1374  ;;  %v360_v9 = vpack.c.bf16 %v357_v37, %v356_v6 }
 0x268   :  { %v1377_v10 = vunpack.i.h.bf16 %v1375_v8  ;;  %v1376_v23 = vunpack.i.l.bf16 %v1375_v8 }
 0x269   :  { %506 = vmatmul.mubr.bf16.vlgmr.msra.gmra.mrb[0].mxu1 %v360_v9 }
 0x26a   :  { %1280 = vmatprep.mubr.msk.bf16.mxu1 %vm355_vm9, %v363_v63  ;;  %v358_v13 = vsel %vm355_vm9, %v322_v11, %v1376_v23  ;;  %v359_v14 = vsel %vm355_vm9, %v312_v46, %v1377_v10 }
 0x26b   :  { %v362_v51 = vpack.c.bf16 %v359_v14, %v358_v13 }
 0x271   :  { %514 = vmatmul.mubr.bf16.gmra.mrb[4].mxu1 %v362_v51 }
 0x33c   :  { %v507_v30 = vpop.f32.mrb[0].mxu1 }
 0x33d   :  { %v508_v32 = vadd.f32 %v1676_v29, %v507_v30  ;;  %v509_v33 = vpop.f32.mrb[1].mxu1 }
 0x33e   :  { %v510_v34 = vpop.f32.mrb[2].mxu1 }
 0x33f   :  { %v522_v35 = vmax.f32 %v508_v32, 0.0  ;;  %v511_v36 = vadd.f32 %v1676_v29, %v510_v34  ;;  %v512_v12 = vpop.f32.mrb[3].mxu1 }
 0x341   :  { %v530_v38 = vcombine.high %v522_v35, %v522_v35  ;;  %v537_v39 = vrot.slane %v522_v35, %v1679_v31  ;;  %v523_v40 = vmax.f32 %v511_v36, 0.0 }
 0x343   :  { %v544_v41 = vrot.slane %v530_v38, %v1679_v31  ;;  %v545_v42 = vcombine.high %v537_v39, %v537_v39  ;;  %v615_v43 = vsel %vm614_vm10, %v537_v39, -inf  ;;  %v547_v44 = vcombine.high %v523_v40, %v523_v40 }
 0x344   :  { %v616_v46 = vrot.slane %v615_v43, 4  ;;  %v554_v47 = vrot.slane %v523_v40, %v1679_v31  ;;  %v515_v48 = vpop.f32.mrb[4].mxu1 }
 0x345   :  { %v546_v50 = vcombine.high %v544_v41, %v544_v41  ;;  %v622_v52 = vsel %vm614_vm10, %v545_v42, -inf  ;;  %v629_v54 = vsel %vm614_vm10, %v544_v41, -inf  ;;  %v561_v55 = vrot.slane %v547_v44, %v1679_v31  ;;  %v517_v56 = vpop.f32.mrb[5].mxu1 }
 0x346   :  { %v617_v57 = vmax.f32 %v615_v43, %v616_v46  ;;  %v623_v58 = vrot.slane %v622_v52, 4  ;;  %v630_v59 = vrot.slane %v629_v54, 4  ;;  %v562_v60 = vcombine.high %v554_v47, %v554_v47  ;;  %v518_v61 = vpop.f32.mrb[6].mxu1 }
 0x347   :  { %v636_v62 = vsel %vm614_vm10, %v546_v50, -inf  ;;  %v563_v63 = vcombine.high %v561_v55, %v561_v55  ;;  %v643_v0 = vsel %vm614_vm10, %v554_v47, -inf  ;;  %v657_v1 = vsel %vm614_vm10, %v561_v55, -inf  ;;  %v520_v2 = vpop.f32.mrb[7].mxu1 }
 0x348   :  { %v618_v3 = vrot.slane %v617_v57, 2  ;;  %v624_v4 = vmax.f32 %v622_v52, %v623_v58  ;;  %v631_v6 = vmax.f32 %v629_v54, %v630_v59  ;;  %v637_v37 = vrot.slane %v636_v62, 4 }
 0x349   :  { %v644_v8 = vrot.slane %v643_v0, 4  ;;  %v650_v9 = vsel %vm614_vm10, %v562_v60, -inf  ;;  %v658_v10 = vrot.slane %v657_v1, 4  ;;  %v664_v23 = vsel %vm614_vm10, %v563_v63, -inf }
 0x34a   :  { %v619_v11 = vmax.f32 %v617_v57, %v618_v3  ;;  %v625_v13 = vrot.slane %v624_v4, 2  ;;  %v632_v14 = vrot.slane %v631_v6, 2  ;;  %v638_v51 = vmax.f32 %v636_v62, %v637_v37 }
 0x34b   :  { %v645_v15 = vmax.f32 %v643_v0, %v644_v8  ;;  %v651_v16 = vrot.slane %v650_v9, 4  ;;  %v659_v53 = vmax.f32 %v657_v1, %v658_v10  ;;  %v665_v17 = vrot.slane %v664_v23, 4 }
 0x34c   :  { %v620_v18 = vrot.slane %v619_v11, 1  ;;  %v626_v19 = vmax.f32 %v624_v4, %v625_v13  ;;  %v633_v20 = vmax.f32 %v631_v6, %v632_v14  ;;  %v639_v21 = vrot.slane %v638_v51, 2 }
 0x34d   :  { %v646_v22 = vrot.slane %v645_v15, 2  ;;  %v652_v24 = vmax.f32 %v650_v9, %v651_v16  ;;  %v660_v25 = vrot.slane %v659_v53, 2  ;;  %v666_v26 = vmax.f32 %v664_v23, %v665_v17 }
 0x34e   :  { %v621_v27 = vmax.f32 %v619_v11, %v620_v18  ;;  %v627_v28 = vrot.slane %v626_v19, 1  ;;  %v634_v30 = vrot.slane %v633_v20, 1  ;;  %v640_v32 = vmax.f32 %v638_v51, %v639_v21 }
 0x34f   :  { %v647_v33 = vmax.f32 %v645_v15, %v646_v22  ;;  %v653_v34 = vrot.slane %v652_v24, 2  ;;  %v661_v35 = vmax.f32 %v659_v53, %v660_v25  ;;  %v667_v36 = vrot.slane %v666_v26, 2 }
 0x350   :  { %v628_v12 = vmax.f32 %v626_v19, %v627_v28  ;;  %v1697_v38 = vmax.f32 %v633_v20, %v634_v30  ;;  %v641_v39 = vrot.slane %v640_v32, 1  ;;  %v516_v40 = vadd.f32 %v1676_v29, %v515_v48 }
 0x351   :  { %v648_v41 = vrot.slane %v647_v33, 1  ;;  %v654_v42 = vmax.f32 %v652_v24, %v653_v34  ;;  %v662_v43 = vrot.slane %v661_v35, 1  ;;  %v519_v44 = vadd.f32 %v1676_v29, %v518_v61 }
 0x352   :  { %v1701_v46 = vmax.f32 %v640_v32, %v641_v39  ;;  %v744_v47 = vsel %vm743_vm11, %v628_v12, %v621_v27  ;;  %v1705_v50 = vsel %vm755_vm12, %v628_v12, %v621_v27  ;;  %v524_v52 = vmax.f32 %v516_v40, 0.0 }
 0x353   :  { %v746_v54 = vsel %vm745_vm13, %v1697_v38, %v744_v47  ;;  %v1709_v55 = vmax.f32 %v647_v33, %v648_v41  ;;  %v655_v56 = vrot.slane %v654_v42, 1  ;;  %v525_v48 = vmax.f32 %v519_v44, 0.0 }
 0x354   :  { %v748_v57 = vsel %vm747_vm14, %v1701_v46, %v746_v54  ;;  %v564_v58 = vcombine.high %v524_v52, %v524_v52  ;;  %v571_v29 = vrot.slane %v524_v52, %v1679_v31  ;;  %v1714_v59 = vmax.f32 %v661_v35, %v662_v43 }
 0x355   :  { %v1716_v60 = vmax.f32 %v654_v42, %v655_v56  ;;  %v1720_v61 = vsel %vm749_vm15, %v1709_v55, %v748_v57  ;;  %v581_v62 = vcombine.high %v525_v48, %v525_v48  ;;  %v588_v63 = vrot.slane %v525_v48, %v1679_v31 }
 0x356   :  { %v578_v0 = vrot.slane %v564_v58, %v1679_v31  ;;  %v579_v1 = vcombine.high %v571_v29, %v571_v29  ;;  %v671_v2 = vsel %vm614_vm10, %v571_v29, -inf  ;;  %v1725_v3 = vmax.f32 %v666_v26, %v667_v36  ;;  %v1409_v58 = vld [vmem:[%s1857_s7 + $0x8] sm:$0xff]  }
 0x357   :  { %v672_v4 = vrot.slane %v671_v2, 4  ;;  %v595_v6 = vrot.slane %v581_v62, %v1679_v31  ;;  %v596_v37 = vcombine.high %v588_v63, %v588_v63  ;;  %v699_v8 = vsel %vm614_vm10, %v588_v63, -inf }
 0x358   :  { %v580_v9 = vcombine.high %v578_v0, %v578_v0  ;;  %v678_v10 = vsel %vm614_vm10, %v579_v1, -inf  ;;  %v685_v23 = vsel %vm614_vm10, %v578_v0, -inf  ;;  %v700_v11 = vrot.slane %v699_v8, 4 }
 0x359   :  { %v673_v13 = vmax.f32 %v671_v2, %v672_v4  ;;  %v679_v14 = vrot.slane %v678_v10, 4  ;;  %v686_v51 = vrot.slane %v685_v23, 4  ;;  %v597_v15 = vcombine.high %v595_v6, %v595_v6 }
 0x35a   :  { %v692_v16 = vsel %vm614_vm10, %v580_v9, -inf  ;;  %v701_v53 = vmax.f32 %v699_v8, %v700_v11  ;;  %v706_v17 = vsel %vm614_vm10, %v596_v37, -inf  ;;  %v713_v18 = vsel %vm614_vm10, %v595_v6, -inf }
 0x35b   :  { %v674_v19 = vrot.slane %v673_v13, 2  ;;  %v680_v20 = vmax.f32 %v678_v10, %v679_v14  ;;  %v687_v21 = vmax.f32 %v685_v23, %v686_v51  ;;  %v693_v22 = vrot.slane %v692_v16, 4  ;;  %v1407_v51 = vld [vmem:[%s1855_s5 + $0x58] sm:$0xff]  }
 0x35c   :  { %v702_v24 = vrot.slane %v701_v53, 2  ;;  %v707_v25 = vrot.slane %v706_v17, 4  ;;  %v714_v26 = vrot.slane %v713_v18, 4  ;;  %v720_v27 = vsel %vm614_vm10, %v597_v15, -inf  ;;  %942 = vmatpush1.bf16.msra.mxu0 %v1407_v51 }
 0x35d   :  { %v675_v28 = vmax.f32 %v673_v13, %v674_v19  ;;  %v681_v30 = vrot.slane %v680_v20, 2  ;;  %v688_v32 = vrot.slane %v687_v21, 2  ;;  %v694_v33 = vmax.f32 %v692_v16, %v693_v22 }
 0x35e   :  { %v703_v34 = vmax.f32 %v701_v53, %v702_v24  ;;  %v708_v35 = vmax.f32 %v706_v17, %v707_v25  ;;  %v715_v36 = vmax.f32 %v713_v18, %v714_v26  ;;  %v721_v12 = vrot.slane %v720_v27, 4 }
 0x35f   :  { %v676_v39 = vrot.slane %v675_v28, 1  ;;  %v682_v40 = vmax.f32 %v680_v20, %v681_v30  ;;  %v689_v41 = vmax.f32 %v687_v21, %v688_v32  ;;  %v695_v42 = vrot.slane %v694_v33, 2 }
 0x360   :  { %v704_v43 = vrot.slane %v703_v34, 1  ;;  %v709_v44 = vrot.slane %v708_v35, 2  ;;  %v716_v47 = vrot.slane %v715_v36, 2  ;;  %v722_v52 = vmax.f32 %v720_v27, %v721_v12 }
 0x361   :  { %v677_v54 = vmax.f32 %v675_v28, %v676_v39  ;;  %v683_v56 = vrot.slane %v682_v40, 1  ;;  %v690_v48 = vrot.slane %v689_v41, 1  ;;  %v696_v57 = vmax.f32 %v694_v33, %v695_v42 }
 0x362   :  { %v705_v29 = vmax.f32 %v703_v34, %v704_v43  ;;  %v710_v62 = vmax.f32 %v708_v35, %v709_v44  ;;  %v717_v63 = vmax.f32 %v715_v36, %v716_v47  ;;  %v723_v0 = vrot.slane %v722_v52, 2 }
 0x363   :  { %v684_v1 = vmax.f32 %v682_v40, %v683_v56  ;;  %v691_v2 = vmax.f32 %v689_v41, %v690_v48  ;;  %v697_v4 = vrot.slane %v696_v57, 1  ;;  %v669_v6 = vrot.slane %v1725_v3, 1  ;;  %v1408_v48 = vld [vmem:[%s1857_s7] sm:$0xff]  }
 0x364   :  { %v711_v37 = vrot.slane %v710_v62, 1  ;;  %v718_v8 = vrot.slane %v717_v63, 1  ;;  %v724_v9 = vmax.f32 %v722_v52, %v723_v0  ;;  %v790_v10 = vsel %vm743_vm11, %v1697_v38, %v1705_v50 }
 0x365   :  { %v698_v23 = vmax.f32 %v696_v57, %v697_v4  ;;  %v796_v11 = vsel %vm755_vm12, %v684_v1, %v677_v54  ;;  %v670_v13 = vmax.f32 %v1725_v3, %v669_v6  ;;  %v791_v14 = vsel %vm745_vm13, %v1701_v46, %v790_v10 }
 0x366   :  { %v712_v15 = vmax.f32 %v710_v62, %v711_v37  ;;  %v719_v16 = vmax.f32 %v717_v63, %v718_v8  ;;  %v725_v53 = vrot.slane %v724_v9, 1  ;;  %v792_v17 = vsel %vm747_vm14, %v1709_v55, %v791_v14  ;;  %v1411_v62 = vld [vmem:[%s1857_s7 + $0x18] sm:$0xff]   ;;  %v1281_v63 = vld [vmem:[%s1856_s6] ss:$0 sm:$0xff] }
 0x367   :  { %v756_v38 = vsel %vm755_vm12, %v677_v54, %v670_v13  ;;  %v793_v50 = vsel %vm749_vm15, %v1716_v60, %v792_v17  ;;  %v797_v3 = vsel %vm743_vm11, %v691_v2, %v796_v11  ;;  %v752_v46 = vsel %vm751_vm2, %v1716_v60, %v1720_v61 }
 0x368   :  { %v726_v18 = vmax.f32 %v724_v9, %v725_v53  ;;  %v757_v19 = vsel %vm743_vm11, %v684_v1, %v756_v38  ;;  %v794_v20 = vsel %vm751_vm2, %v1714_v59, %v793_v50  ;;  %v798_v55 = vsel %vm745_vm13, %v698_v23, %v797_v3 }
 0x369   :  { %v758_v21 = vsel %vm745_vm13, %v691_v2, %v757_v19  ;;  %v795_v22 = vsel %vm753_vm3, %v670_v13, %v794_v20  ;;  %v799_v24 = vsel %vm747_vm14, %v705_v29, %v798_v55  ;;  %v754_v25 = vsel %vm753_vm3, %v1714_v59, %v752_v46 }
 0x36a   :  { %v759_v60 = vsel %vm747_vm14, %v698_v23, %v758_v21  ;;  %v767_v61 = vsel %vm130_vm0, %v726_v18, 0.0  ;;  %v800_v26 = vsel %vm749_vm15, %v712_v15, %v799_v24  ;;  %v766_v27 = vsel %vm130_vm0, 0.0, %v754_v25 }
 0x36b   :  { %v801_v28 = vsel %vm751_vm2, %v719_v16, %v800_v26  ;;  %v760_v30 = vsel %vm749_vm15, %v705_v29, %v759_v60  ;;  %v783_v33 = vrot.slane %v767_v61, 2  ;;  %v772_v35 = vsel %vm1737_vm4, 0.0, %v766_v27  ;;  %v1410_v29 = vld [vmem:[%s1857_s7 + $0x10] sm:$0xff]  }
 0x36c   :  { %v802_v59 = vsel %vm753_vm3, %v726_v18, %v801_v28  ;;  %v761_v34 = vsel %vm751_vm2, %v712_v15, %v760_v30  ;;  %vm124_vm0 = vcmp.eq.s32.totalorder %v120_v49, 7  ;;  %v780_v39 = vrot.slane %v766_v27, 2 }
 0x36d   :  { %v1378_v36 = vpack.i.bf16 %v802_v59, %v795_v22  ;;  %v762_v12 = vsel %vm753_vm3, %v719_v16, %v761_v34  ;;  %v1441_v57 = vmov 0.0  }
 0x36e   :  { %v781_v40 = vrot.slane %v762_v12, 2  ;;  %v773_v41 = vsel %vm1778_vm6, 0.0, %v762_v12  ;;  %1315 = vmatprep.subr.bf16.mxu1 %v1441_v57 }
 0x36f   :  { %1379 = vrot.lane.b32.xlu1 %v1378_v36, %s1439_s2  ;;  %1316 = vmatpush3.bf16.msra.mxu1 %v1408_v48 }
 0x370   :  { %v782_v42 = vsel %vm167_vm1, %v780_v39, %v781_v40  ;;  %v784_v43 = vsel %vm167_vm1, %v781_v40, %v783_v33  ;;  %1317 = vmatprep.subr.bf16.mxu1 %v1441_v57  ;;  %vm1442_vm1 = vmmov 0  }
 0x371   :  { %v787_v44 = vsel %vm124_vm0, 0.0, %v782_v42  ;;  %v788_v47 = vsel %vm125_vm7, 0.0, %v784_v43  ;;  %1323 = vmatprep.mubr.msk.bf16.mxu1 %vm1442_vm1, %v1441_v57 }
 0x372   :  { %v812_v5 = vpack.c.bf16 %v788_v47, %v787_v44 }
 0x373   :  { %1318 = vmatpush3.bf16.msra.mxu1 %v1409_v58 }
 0x374   :  { %1294 = vmatprep.mubr.msk.bf16.mxu0 %vm355_vm9, %v812_v5  ;;  %1319 = vmatprep.subr.bf16.mxu1 %v1441_v57 }
 0x377   :  { %1320 = vmatpush3.bf16.msra.mxu1 %v1410_v29 }
 0x378   :  { %1321 = vmatprep.subr.bf16.mxu1 %v1441_v57 }
 0x37b   :  { %1322 = vmatpush3.bf16.msra.mxu1 %v1411_v62 }
 0x3e1   :  { %v1380_v49 = vpop.permute.xlu1 %1379 }
 0x3e2   :  { %v1382_v52 = vunpack.i.h.bf16 %v1380_v49  ;;  %v1381_v7 = vunpack.i.l.bf16 %v1380_v49 }
 0x3e4   :  { %v810_v45 = vsel %vm355_vm9, %v773_v41, %v1382_v52  ;;  %v809_v54 = vsel %vm355_vm9, %v772_v35, %v1381_v7 }
 0x3e5   :  { %v811_v56 = vpack.c.bf16 %v810_v45, %v809_v54 }
 0x3e7   :  { %952 = vmatmul.mubr.bf16.vlgmr.msra.gmra.mrb[4].mxu0 %v811_v56 }
 0x4ba   :  { %v953_v0 = vpop.f32.mrb[4].mxu0 }
 0x4bb   :  { %v954_v1 = vadd.f32 %v1281_v63, %v953_v0  ;;  %v955_v2 = vpop.f32.mrb[5].mxu0 }
 0x4bc   :  { %v956_v4 = vpop.f32.mrb[6].mxu0 }
 0x4bd   :  { %v960_v6 = vmax.f32 %v954_v1, 0.0  ;;  %v957_v37 = vadd.f32 %v1281_v63, %v956_v4  ;;  %v958_v8 = vpop.f32.mrb[7].mxu0 }
 0x4bf   :  { %v964_v9 = vcombine.high %v960_v6, %v960_v6  ;;  %v971_v10 = vrot.slane %v960_v6, %v1679_v31  ;;  %v961_v23 = vmax.f32 %v957_v37, 0.0 }
 0x4c1   :  { %v978_v11 = vrot.slane %v964_v9, %v1679_v31  ;;  %v979_v13 = vcombine.high %v971_v10, %v971_v10  ;;  %v1006_v14 = vsel %vm614_vm10, %v971_v10, -inf  ;;  %v981_v51 = vcombine.high %v961_v23, %v961_v23 }
 0x4c2   :  { %v1007_v15 = vrot.slane %v1006_v14, 4  ;;  %v988_v16 = vrot.slane %v961_v23, %v1679_v31 }
 0x4c3   :  { %v980_v53 = vcombine.high %v978_v11, %v978_v11  ;;  %v1013_v17 = vsel %vm614_vm10, %v979_v13, -inf  ;;  %v1020_v38 = vsel %vm614_vm10, %v978_v11, -inf  ;;  %v995_v50 = vrot.slane %v981_v51, %v1679_v31 }
 0x4c4   :  { %v1008_v3 = vmax.f32 %v1006_v14, %v1007_v15  ;;  %v1014_v46 = vrot.slane %v1013_v17, 4  ;;  %v1021_v18 = vrot.slane %v1020_v38, 4  ;;  %v996_v19 = vcombine.high %v988_v16, %v988_v16 }
 0x4c5   :  { %v1027_v20 = vsel %vm614_vm10, %v980_v53, -inf  ;;  %v997_v55 = vcombine.high %v995_v50, %v995_v50  ;;  %v1034_v21 = vsel %vm614_vm10, %v988_v16, -inf  ;;  %v1048_v22 = vsel %vm614_vm10, %v995_v50, -inf }
 0x4c6   :  { %v1009_v24 = vrot.slane %v1008_v3, 2  ;;  %v1015_v25 = vmax.f32 %v1013_v17, %v1014_v46  ;;  %v1022_v60 = vmax.f32 %v1020_v38, %v1021_v18  ;;  %v1028_v61 = vrot.slane %v1027_v20, 4 }
 0x4c7   :  { %v1035_v26 = vrot.slane %v1034_v21, 4  ;;  %v1041_v27 = vsel %vm614_vm10, %v996_v19, -inf  ;;  %v1049_v28 = vrot.slane %v1048_v22, 4  ;;  %v1055_v31 = vsel %vm614_vm10, %v997_v55, -inf }
 0x4c8   :  { %v1010_v30 = vmax.f32 %v1008_v3, %v1009_v24  ;;  %v1016_v32 = vrot.slane %v1015_v25, 2  ;;  %v1023_v33 = vrot.slane %v1022_v60, 2  ;;  %v1029_v59 = vmax.f32 %v1027_v20, %v1028_v61 }
 0x4c9   :  { %v1036_v34 = vmax.f32 %v1034_v21, %v1035_v26  ;;  %v1042_v35 = vrot.slane %v1041_v27, 4  ;;  %v1050_v36 = vmax.f32 %v1048_v22, %v1049_v28  ;;  %v1056_v12 = vrot.slane %v1055_v31, 4  ;;  %v1295_v28 = vld [vmem:[%s1858_s8] ss:$0 sm:$0xff] }
 0x4ca   :  { %v1011_v39 = vrot.slane %v1010_v30, 1  ;;  %v1017_v40 = vmax.f32 %v1015_v25, %v1016_v32  ;;  %v1024_v41 = vmax.f32 %v1022_v60, %v1023_v33  ;;  %v1030_v42 = vrot.slane %v1029_v59, 2 }
 0x4cb   :  { %v1037_v43 = vrot.slane %v1036_v34, 2  ;;  %v1043_v44 = vmax.f32 %v1041_v27, %v1042_v35  ;;  %v1051_v47 = vrot.slane %v1050_v36, 2  ;;  %v1057_v5 = vmax.f32 %v1055_v31, %v1056_v12 }
 0x4cc   :  { %v1012_v49 = vmax.f32 %v1010_v30, %v1011_v39  ;;  %v1018_v52 = vrot.slane %v1017_v40, 1  ;;  %v1025_v7 = vrot.slane %v1024_v41, 1  ;;  %v1031_v45 = vmax.f32 %v1029_v59, %v1030_v42 }
 0x4cd   :  { %v1038_v54 = vmax.f32 %v1036_v34, %v1037_v43  ;;  %v1044_v56 = vrot.slane %v1043_v44, 2  ;;  %v1052_v48 = vmax.f32 %v1050_v36, %v1051_v47  ;;  %v1058_v57 = vrot.slane %v1057_v5, 2 }
 0x4ce   :  { %v1019_v58 = vmax.f32 %v1017_v40, %v1018_v52  ;;  %v1026_v29 = vmax.f32 %v1024_v41, %v1025_v7  ;;  %v1032_v62 = vrot.slane %v1031_v45, 1  ;;  %v1062_v63 = vpack.c.bf16 %v1012_v49, %v1012_v49 }
 0x4cf   :  { %v1039_v0 = vrot.slane %v1038_v54, 1  ;;  %v1045_v1 = vmax.f32 %v1043_v44, %v1044_v56  ;;  %v1053_v2 = vrot.slane %v1052_v48, 1  ;;  %v1059_v4 = vmax.f32 %v1057_v5, %v1058_v57 }
 0x4d0   :  { %v1033_v6 = vmax.f32 %v1031_v45, %v1032_v62  ;;  %v1063_v37 = vpack.c.bf16 %v1019_v58, %v1019_v58  ;;  %v1064_v8 = vpack.c.bf16 %v1026_v29, %v1026_v29  ;;  %v1093_v14 = vunpack.c.l.b16 %v1062_v63 }
 0x4d1   :  { %v1040_v9 = vmax.f32 %v1038_v54, %v1039_v0  ;;  %v1046_v10 = vrot.slane %v1045_v1, 1  ;;  %v1054_v23 = vmax.f32 %v1052_v48, %v1053_v2  ;;  %v1060_v11 = vrot.slane %v1059_v4, 1 }
 0x4d2   :  { %v1065_v13 = vpack.c.bf16 %v1033_v6, %v1033_v6  ;;  %v1094_v51 = vunpack.c.l.b16 %v1063_v37  ;;  %v1095_v15 = vunpack.c.l.b16 %v1064_v8 }
 0x4d3   :  { %v1047_v16 = vmax.f32 %v1045_v1, %v1046_v10  ;;  %v1061_v53 = vmax.f32 %v1059_v4, %v1060_v11  ;;  %v1066_v17 = vpack.c.bf16 %v1040_v9, %v1040_v9  ;;  %v1068_v3 = vpack.c.bf16 %v1054_v23, %v1054_v23 }
 0x4d4   :  { %v1096_v38 = vunpack.c.l.b16 %v1065_v13  ;;  %v1101_v50 = vsel %vm755_vm12, %v1094_v51, %v1093_v14 }
 0x4d5   :  { %v1102_v46 = vsel %vm743_vm11, %v1095_v15, %v1101_v50  ;;  %v1067_v18 = vpack.c.bf16 %v1047_v16, %v1047_v16  ;;  %v1069_v19 = vpack.c.bf16 %v1061_v53, %v1061_v53  ;;  %v1097_v20 = vunpack.c.l.b16 %v1066_v17 }
 0x4d6   :  { %v1103_v55 = vsel %vm745_vm13, %v1096_v38, %v1102_v46  ;;  %v1099_v24 = vunpack.c.l.b16 %v1068_v3 }
 0x4d7   :  { %v1098_v21 = vunpack.c.l.b16 %v1067_v18  ;;  %v1104_v22 = vsel %vm747_vm14, %v1097_v20, %v1103_v55  ;;  %v1100_v25 = vunpack.c.l.b16 %v1069_v19 }
 0x4d9   :  { %v1105_v60 = vsel %vm749_vm15, %v1098_v21, %v1104_v22 }
 0x4da   :  { %v1106_v61 = vsel %vm751_vm2, %v1099_v24, %v1105_v60 }
 0x4db   :  { %v1107_v26 = vsel %vm753_vm3, %v1100_v25, %v1106_v61 }
 0x4dc   :  { %v1108_v27 = vpack.c.b16 %v1107_v26, %v1107_v26 }
 0x4de   :  { %1324 = vmatmul.mubr.msk.bf16.vlgmr.msra.gmra.mrb[8].mxu1 %vm355_vm9, %v1108_v27 }
 0x5b1   :  { %v1170_v31 = vpop.f32.mrb[8].mxu1 }
 0x5b2   :  { %v1171_v30 = vadd.f32 %v1295_v28, %v1170_v31  ;;  %v1325_v32 = vpop.f32.mrb[9].mxu1 }
 0x5b3   :  { %v1173_v33 = vpop.f32.mrb[10].mxu1 }
 0x5b4   :  { %v1177_v59 = vcombine.high %v1171_v30, %v1171_v30  ;;  %1179 = vxpose.xlu1.b32.start.end [1/1] (short) (narrow) %v1171_v30, 8  ;;  %v1326_v34 = vpop.f32.mrb[11].mxu1 }
 0x5b6   :  { %1211 = vxpose.xlu0.b32.start.end [1/1] (short) (narrow) %v1177_v59, 8 }
 0x634   :  { %v1195_v35 = vpop.trf.xlu1 }
 0x636   :  { %v1227_v36 = vpop.trf.xlu0 }
 0x637   :  { %v1245_v12 = vcombine.low %v1195_v35, %v1227_v36 }
 0x639   :  { %1247 = vst.msk [vmem:[#allocation2] sm:$0xff] %vm213_vm5, %v1245_v12 }
 0x63a   :  { %1423 = shalt.err (!%p1420_p4)
}
 0x63b   :  { %s1424_s28 = scalar_lea.hbm %s1859_s9, 128 }
 0x63c   :  { %p1425_p5 = scmp.ne.s32.totalorder %s1859_s9, %s1424_s28  ;;  %p1428_p6 = scmp.lt.u32.totalorder %s1424_s28, %s1859_s9 }
 0x63e   :  { %p1430_p7 = pnand %p1428_p6, %p1425_p5 }
 0x640   :  { %1433 = shalt.err (!%p1430_p7)
}
 0x641   :  { %1257 = dma.vmem_to_hbm [thread:$0]  %s1255_s25, 128, %s1859_s9, [#allocation3]  }
 0x642   :  { %1434 = dma.done.wait [#allocation3], 128  }
 0x643   :  { %1435 = vsyncadd [#allocation3], 4294967168 }
 0x644   :  { %1261 = vsyncpa [#allocation3], 1 }

</bundles_post_ra>
